<compile_context>
chip_gen: v7x
topology: tpu7x:2x2x1
jax: 0.10.0
libtpu: 0.0.40
codegen_flags: <defaults>
</compile_context>

<pallas_src>
import functools

import numpy as np
import jax
import jax.numpy as jnp
from jax.experimental import pallas as pl
from jax.experimental.pallas import tpu as pltpu


# ----------------------------------------------------------------------------------
# Pallas kernel: one batch block (Bb samples) per grid step.
#   x_ref    : (Bb, Tp, C)    raw signal block, time-major per sample (compute dtype)
#   w1_ref   : (Kt*C, Fs)     conv_time o conv_spat o BN fused weight, row = k*C + c
#   b1_ref   : (1, Fs)        fused bias / BN shift (f32)
#   pool_ref : (T2, T1p)      0/1 average-pool matrix (f32; 1/Pl applied here in f32)
#   wc_ref   : (Kc*Fs, N)     conv_classifier weight, row = k*Fs + s
#   bc_ref   : (1, N)         conv_classifier bias (f32)
#   out_ref  : (Bb, T3, N)    per-sample log-softmax output (f32)
# ----------------------------------------------------------------------------------
def _shallow_kernel(x_ref, w1_ref, b1_ref, pool_ref, wc_ref, bc_ref, out_ref,
                    *, inv_pool_len, safe_eps):
    Bb, Tp, C = x_ref.shape
    CK, Fs = w1_ref.shape
    Kt = CK // C
    T2, T1p = pool_ref.shape
    KF, N = wc_ref.shape
    Kc = KF // Fs
    _, T3, _ = out_ref.shape
    cdt = w1_ref.dtype

    # ---- conv_time -> conv_spat -> BatchNorm: in-VMEM window build + ONE MXU matmul ----
    # Windows are built from the VMEM-resident raw block (no Kt-inflated im2col in HBM).
    x = x_ref[...]                                                   # (Bb, Tp, C)
    win = jnp.concatenate([x[:, k:k + T1p, :] for k in range(Kt)], axis=-1)
    y = jnp.dot(win.reshape(Bb * T1p, CK), w1_ref[...],
                preferred_element_type=jnp.float32)                  # (Bb*T1p, Fs), f32 acc
    y = y + b1_ref[...]                                              # folded bias + BN shift
    z = (y * y).reshape(Bb, T1p, Fs)                                 # Square, stays f32

    # ---- AvgPool2d((Pl,1), stride (Ps,1)): ONE batched f32 matmul over the block ----
    pool_b = jnp.broadcast_to(pool_ref[...][None], (Bb, T2, T1p))    # hoisted, built once
    pooled = jnp.einsum('bpt,bts->bps', pool_b, z,
                        preferred_element_type=jnp.float32) * inv_pool_len   # (Bb, T2, Fs)

    # ---- SafeLog (Dropout is identity: module is constructed in eval mode) ----
    logp = jnp.log(jnp.maximum(pooled, safe_eps))                    # (Bb, T2, Fs)

    # ---- conv_classifier: Kc windows built once per block, ONE batched matmul ----
    winc = jnp.concatenate([logp[:, k:k + T3, :] for k in range(Kc)], axis=-1)
    wc_b = jnp.broadcast_to(wc_ref[...][None], (Bb, KF, N))
    logits = jnp.einsum('btf,bfn->btn', winc.astype(cdt), wc_b,
                        preferred_element_type=jnp.float32) + bc_ref[...]    # (Bb, T3, N)

    # ---- LogSoftmax over the class dim; single direct store (no list / stack) ----
    m = jnp.max(logits, axis=-1, keepdims=True)
    lse = m + jnp.log(jnp.sum(jnp.exp(logits - m), axis=-1, keepdims=True))
    out_ref[...] = logits - lse                                      # (Bb, T3, N)


# ----------------------------------------------------------------------------------
# Wrapper: weight fusion, VMEM-budgeted batch block, pallas_call, final layout.
# ----------------------------------------------------------------------------------
def shallow_network_forward(x, params, cfg, *, compute_dtype=jnp.bfloat16,
                            batch_block=8, vmem_budget_bytes=None):
    B, C, T = x.shape
    Kt = cfg["filter_time_length"]
    Fs = cfg["n_filters_spat"]
    Pl, Ps = cfg["pool_time_length"], cfg["pool_time_stride"]
    Kc, N = cfg["final_conv_length"], cfg["n_classes"]

    T1 = T - Kt + 1
    T2 = (T1 - Pl) // Ps + 1
    T3 = T2 - Kc + 1
    CK = C * Kt
    T1p = -(-T1 // 8) * 8                   # conv-output rows per sample, 8-sublane aligned
    Tp = -(-(T1p + Kt - 1) // 8) * 8        # raw rows so every k:k+T1p window slice is valid
    # Pool matrix must have zero columns for the zero-padded rows T1..T1p-1.
    assert (T2 - 1) * Ps + Pl <= T1, "pool window would read zero-padded time rows"

    # ---- derive batch block + VMEM limit from a budget (v7x has only 64 MiB VMEM) ----
    if vmem_budget_bytes is None:
        vmem_budget_bytes = 48 << 20                       # safe on v7x
        try:
            info = pltpu.get_tpu_info()
            if getattr(info, "vmem_capacity_bytes", 0) >= (100 << 20):
                vmem_budget_bytes = 96 << 20               # v5e / v6e: 128 MiB physical
        except Exception:
            pass
    itemsize = jnp.dtype(compute_dtype).itemsize
    per_sample = (2 * Tp * C * itemsize                    # double-buffered raw block
                  + T1p * CK * itemsize                    # in-VMEM window matrix
                  + 2 * T1p * Fs * 4                       # y and z (f32)
                  + T2 * T1p * 4                           # broadcast pool slice
                  + 2 * T2 * Fs * 4                        # pooled / SafeLog
                  + T3 * Kc * Fs * (4 + itemsize)          # classifier windows (+ cast)
                  + 4 * T3 * N * 4)                        # logits / output
    fixed = (CK * Fs + Kc * Fs * N) * itemsize * 2 + 2 * T2 * T1p * 4 + 2 * (Fs + N) * 4
    cap = max(1, int((vmem_budget_bytes // 2 - fixed) // max(per_sample, 1)))
    Bb = max(1, min(batch_block, cap, B))
    if B >= 2:
        Bb = min(Bb, -(-B // 2))            # keep the grid >= 2 so both v7x TCs get work
    B_pad = -(-B // Bb) * Bb
    vmem_limit = int(min(vmem_budget_bytes, max(32 << 20, 3 * (fixed + Bb * per_sample))))

    hp = jax.lax.Precision.HIGHEST

    # ---- fold conv_time * conv_spat * (eval) BatchNorm into one weight / bias ----
    wt = params["conv_time_w"][:, 0, :, 0]                      # (Ft, Kt)
    bt = params["conv_time_b"]                                  # (Ft,)
    ws = params["conv_spat_w"][:, :, 0, :]                      # (Fs, Ft, C)
    w2 = jnp.einsum("fk,sfc->kcs", wt, ws, precision=hp).reshape(CK, Fs)  # row = k*C + c
    b2 = jnp.einsum("f,sfc->s", bt, ws, precision=hp)           # (Fs,)
    scale = params["bn_gamma"] / jnp.sqrt(params["bn_var"] + 1e-5)
    shift = params["bn_beta"] - params["bn_mean"] * scale
    w1 = (w2 * scale[None, :]).astype(compute_dtype)            # (CK, Fs)
    b1 = (b2 * scale + shift).reshape(1, Fs).astype(jnp.float32)

    # ---- classifier weight flattened to (Kc*Fs, N), row index = k*Fs + s ----
    wc = jnp.transpose(params["conv_cls_w"][:, :, :, 0], (2, 1, 0))   # (Kc, Fs, N)
    wc_flat = wc.reshape(Kc * Fs, N).astype(compute_dtype)
    bc = params["conv_cls_b"].reshape(1, N).astype(jnp.float32)

    # ---- 0/1 pooling matrix kept in f32 (pooled reduction stays f32 in-kernel) ----
    pool = np.zeros((T2, T1p), np.float32)
    for i in range(T2):
        pool[i, i * Ps:i * Ps + Pl] = 1.0
    pool = jnp.asarray(pool)

    # ---- raw signal, time-major per sample: (B_pad, Tp, C); no Kt-fold im2col in HBM ----
    xt = jnp.transpose(x, (0, 2, 1))                            # (B, T, C)
    xt = jnp.pad(xt, ((0, B_pad - B), (0, Tp - T), (0, 0))).astype(compute_dtype)

    kernel = functools.partial(_shallow_kernel,
                               inv_pool_len=1.0 / Pl, safe_eps=1e-6)

    out = pl.pallas_call(
        kernel,
        out_shape=jax.ShapeDtypeStruct((B_pad, T3, N), jnp.float32),
        grid=(B_pad // Bb,),
        in_specs=[
            pl.BlockSpec((Bb, Tp, C), lambda i: (i, 0, 0)),     # raw signal block
            pl.BlockSpec((CK, Fs), lambda i: (0, 0)),           # fused conv+BN weight
            pl.BlockSpec((1, Fs), lambda i: (0, 0)),            # fused bias / BN shift
            pl.BlockSpec((T2, T1p), lambda i: (0, 0)),          # f32 pooling matrix
            pl.BlockSpec((Kc * Fs, N), lambda i: (0, 0)),       # classifier weight
            pl.BlockSpec((1, N), lambda i: (0, 0)),             # classifier bias
        ],
        out_specs=pl.BlockSpec((Bb, T3, N), lambda i: (i, 0, 0)),
        compiler_params=pltpu.CompilerParams(
            dimension_semantics=("parallel",),
            vmem_limit_bytes=vmem_limit),
    )(xt, w1, b1, pool, wc_flat, bc)

    out = jnp.transpose(out[:B], (0, 2, 1))        # (B, n_classes, T3) — SqueezeFinalOutput
    if T3 == 1:
        out = out[:, :, 0]                         # (B, n_classes)
    return out


# ----------------------------------------------------------------------------------
# Deterministic parameter init mirroring the module's __init__ (xavier-uniform conv
# weights, zero conv biases, identity BatchNorm with running stats in eval mode).
# ----------------------------------------------------------------------------------
def init_params(key, cfg):
    C, N = cfg["in_chans"], cfg["n_classes"]
    Ft, Kt = cfg["n_filters_time"], cfg["filter_time_length"]
    Fs, Kc = cfg["n_filters_spat"], cfg["final_conv_length"]
    k1, k2, k3 = jax.random.split(key, 3)

    def xavier(k, shape):  # torch conv weight layout (out, in, kh, kw)
        fan_in = shape[1] * shape[2] * shape[3]
        fan_out = shape[0] * shape[2] * shape[3]
        bound = float(np.sqrt(6.0 / (fan_in + fan_out)))
        return jax.random.uniform(k, shape, jnp.float32, -bound, bound)

    return dict(
        conv_time_w=xavier(k1, (Ft, 1, Kt, 1)),
        conv_time_b=jnp.zeros((Ft,), jnp.float32),
        conv_spat_w=xavier(k2, (Fs, Ft, 1, C)),          # bias=False (batch_norm=True)
        bn_gamma=jnp.ones((Fs,), jnp.float32),
        bn_beta=jnp.zeros((Fs,), jnp.float32),
        bn_mean=jnp.zeros((Fs,), jnp.float32),
        bn_var=jnp.ones((Fs,), jnp.float32),
        conv_cls_w=xavier(k3, (N, Fs, Kc, 1)),
        conv_cls_b=jnp.zeros((N,), jnp.float32),
    )


# ----------------------------------------------------------------------------------
# Pure-JAX reference mirroring the PyTorch forward (ground truth for the checks).
# ----------------------------------------------------------------------------------
def reference_forward(x, params, cfg):
    hp = jax.lax.Precision.HIGHEST
    dn = ("NCHW", "OIHW", "NCHW")
    a = x[..., None]                               # Ensure4d: (B, C, T, 1)
    b = jnp.transpose(a, (0, 3, 2, 1))             # Permute4d: (B, 1, T, C)
    c = jax.lax.conv_general_dilated(b, params["conv_time_w"], (1, 1), "VALID",
                                     dimension_numbers=dn, precision=hp)
    c = c + params["conv_time_b"][None, :, None, None]
    d = jax.lax.conv_general_dilated(c, params["conv_spat_w"], (1, 1), "VALID",
                                     dimension_numbers=dn, precision=hp)
    eps = 1e-5
    scale = params["bn_gamma"] / jnp.sqrt(params["bn_var"] + eps)
    shift = params["bn_beta"] - params["bn_mean"] * scale
    e = d * scale[None, :, None, None] + shift[None, :, None, None]
    f = e * e
    Pl, Ps = cfg["pool_time_length"], cfg["pool_time_stride"]
    g = jax.lax.reduce_window(f, 0.0, jax.lax.add,
                              (1, 1, Pl, 1), (1, 1, Ps, 1), "VALID") / Pl
    h = jnp.log(jnp.maximum(g, 1e-6))
    l = jax.lax.conv_general_dilated(h, params["conv_cls_w"], (1, 1), "VALID",
                                     dimension_numbers=dn, precision=hp)
    l = l + params["conv_cls_b"][None, :, None, None]
    m = jax.nn.log_softmax(l, axis=1)
    n = m[:, :, :, 0]
    if n.shape[2] == 1:
        n = n[:, :, 0]
    return n


if __name__ == "__main__":
    # Small config consistent with the module's structure.
    cfg = dict(in_chans=4, n_classes=2, n_filters_time=8, filter_time_length=5,
               n_filters_spat=8, pool_time_length=6, pool_time_stride=3,
               final_conv_length=4)
    B, T = 4, 32

    key = jax.random.PRNGKey(0)
    kx, kp = jax.random.split(key)
    x = jax.random.normal(kx, (B, cfg["in_chans"], T), jnp.float32)
    params = init_params(kp, cfg)

    ref = reference_forward(x, params, cfg)

    # f32 MXU operands: tight numerical check against the HIGHEST-precision reference.
    out_f32 = jax.block_until_ready(
        shallow_network_forward(x, params, cfg, compute_dtype=jnp.float32))
    assert out_f32.shape == ref.shape, (out_f32.shape, ref.shape)
    assert bool(jnp.allclose(out_f32, ref, atol=2e-3, rtol=2e-3)), "f32 mismatch vs reference"

    # bf16 MXU operands (the fast path): pooling stays f32, so only the bf16 rounding of
    # the raw signal / fused weights shifts the log-probabilities slightly.
    out_bf16 = jax.block_until_ready(
        shallow_network_forward(x, params, cfg, compute_dtype=jnp.bfloat16))
    assert out_bf16.shape == ref.shape, (out_bf16.shape, ref.shape)
    bf16_err = float(jnp.max(jnp.abs(out_bf16 - ref)))
    assert bf16_err < 0.25, f"bf16 path drifted too far from reference: {bf16_err}"

    print("KERNEL_OK")
</pallas_src>

<mosaic_0001>
module attributes {stable_mosaic.version = 11 : i64} {
  func.func @_shallow_kernel(%arg0: i32, %arg1: memref<2x40x4xf32, #tpu.memory_space<vmem>>, %arg2: memref<20x8xf32, #tpu.memory_space<vmem>>, %arg3: memref<1x8xf32, #tpu.memory_space<vmem>>, %arg4: memref<8x32xf32, #tpu.memory_space<vmem>>, %arg5: memref<32x2xf32, #tpu.memory_space<vmem>>, %arg6: memref<1x2xf32, #tpu.memory_space<vmem>>, %arg7: memref<2x5x2xf32, #tpu.memory_space<vmem>>) attributes {dimension_semantics = [#tpu.dimension_semantics<parallel>], iteration_bounds = array<i64: 2>, scalar_prefetch = 0 : i64, scratch_operands = 0 : i64, tpu.core_type = #tpu.core_type<tc>, window_params = [{transform_indices = @transform_0, window_bounds = array<i64: 2, 40, 4>}, {pipeline_mode = #tpu.pipeline_mode<synchronous>, transform_indices = @transform_1, window_bounds = array<i64: 20, 8>}, {pipeline_mode = #tpu.pipeline_mode<synchronous>, transform_indices = @transform_2, window_bounds = array<i64: 1, 8>}, {pipeline_mode = #tpu.pipeline_mode<synchronous>, transform_indices = @transform_3, window_bounds = array<i64: 8, 32>}, {pipeline_mode = #tpu.pipeline_mode<synchronous>, transform_indices = @transform_4, window_bounds = array<i64: 32, 2>}, {pipeline_mode = #tpu.pipeline_mode<synchronous>, transform_indices = @transform_5, window_bounds = array<i64: 1, 2>}, {transform_indices = @transform_6, window_bounds = array<i64: 2, 5, 2>}]} {
    %c0 = arith.constant 0 : index
    %c0_0 = arith.constant 0 : index
    %c0_1 = arith.constant 0 : index
    %0 = vector.load %arg1[%c0, %c0_0, %c0_1] : memref<2x40x4xf32, #tpu.memory_space<vmem>>, vector<2x40x4xf32>
    %1 = vector.extract_strided_slice %0 {offsets = [0, 0, 0], sizes = [2, 32, 4], strides = [1, 1, 1]} : vector<2x40x4xf32> to vector<2x32x4xf32>
    %2 = vector.extract_strided_slice %0 {offsets = [0, 1, 0], sizes = [2, 32, 4], strides = [1, 1, 1]} : vector<2x40x4xf32> to vector<2x32x4xf32>
    %3 = vector.extract_strided_slice %0 {offsets = [0, 2, 0], sizes = [2, 32, 4], strides = [1, 1, 1]} : vector<2x40x4xf32> to vector<2x32x4xf32>
    %4 = vector.extract_strided_slice %0 {offsets = [0, 3, 0], sizes = [2, 32, 4], strides = [1, 1, 1]} : vector<2x40x4xf32> to vector<2x32x4xf32>
    %5 = vector.extract_strided_slice %0 {offsets = [0, 4, 0], sizes = [2, 32, 4], strides = [1, 1, 1]} : vector<2x40x4xf32> to vector<2x32x4xf32>
    %6 = tpu.concatenate %1, %2, %3, %4, %5 in 2 : vector<2x32x4xf32>, vector<2x32x4xf32>, vector<2x32x4xf32>, vector<2x32x4xf32>, vector<2x32x4xf32> -> vector<2x32x20xf32>
    %7 = vector.shape_cast %6 : vector<2x32x20xf32> to vector<64x20xf32>
    %c0_2 = arith.constant 0 : index
    %c0_3 = arith.constant 0 : index
    %8 = vector.load %arg2[%c0_2, %c0_3] : memref<20x8xf32, #tpu.memory_space<vmem>>, vector<20x8xf32>
    %cst = arith.constant dense<0.000000e+00> : vector<64x8xf32>
    %9 = tpu.matmul %7, %8, %cst {dimension_numbers = #tpu.dot_dimension_numbers<[1], [0], [0], [1], [0, 0, 1, 1], [], []>} : vector<64x20xf32>, vector<20x8xf32>, vector<64x8xf32> -> vector<64x8xf32>
    %c0_4 = arith.constant 0 : index
    %c0_5 = arith.constant 0 : index
    %10 = vector.load %arg3[%c0_4, %c0_5] : memref<1x8xf32, #tpu.memory_space<vmem>>, vector<1x8xf32>
    %11 = vector.broadcast %10 : vector<1x8xf32> to vector<64x8xf32>
    %12 = arith.addf %9, %11 : vector<64x8xf32>
    %13 = arith.mulf %12, %12 : vector<64x8xf32>
    %14 = vector.shape_cast %13 : vector<64x8xf32> to vector<2x32x8xf32>
    %c0_6 = arith.constant 0 : index
    %c0_7 = arith.constant 0 : index
    %15 = vector.load %arg4[%c0_6, %c0_7] : memref<8x32xf32, #tpu.memory_space<vmem>>, vector<8x32xf32>
    %16 = vector.shape_cast %15 : vector<8x32xf32> to vector<1x8x32xf32>
    %17 = vector.shape_cast %16 : vector<1x8x32xf32> to vector<1x8x32xf32>
    %18 = vector.broadcast %17 : vector<1x8x32xf32> to vector<2x8x32xf32>
    "tpu.trace_start"() <{level = 10 : i32, message = "bpt,bts->bps"}> : () -> ()
    %cst_8 = arith.constant dense<0.000000e+00> : vector<2x8x8xf32>
    %19 = tpu.matmul %18, %14, %cst_8 {dimension_numbers = #tpu.dot_dimension_numbers<[2], [1], [1], [2], [0, 0, 0, 1, 1, 2], [0], [0]>} : vector<2x8x32xf32>, vector<2x32x8xf32>, vector<2x8x8xf32> -> vector<2x8x8xf32>
    "tpu.trace_stop"() : () -> ()
    %cst_9 = arith.constant 0.166666672 : f32
    %20 = vector.broadcast %cst_9 : f32 to vector<2x8x8xf32>
    %21 = arith.mulf %19, %20 : vector<2x8x8xf32>
    %cst_10 = arith.constant 9.99999997E-7 : f32
    %22 = vector.broadcast %cst_10 : f32 to vector<2x8x8xf32>
    %23 = arith.maximumf %21, %22 : vector<2x8x8xf32>
    %24 = math.log %23 : vector<2x8x8xf32>
    %25 = vector.extract_strided_slice %24 {offsets = [0, 0, 0], sizes = [2, 5, 8], strides = [1, 1, 1]} : vector<2x8x8xf32> to vector<2x5x8xf32>
    %26 = vector.extract_strided_slice %24 {offsets = [0, 1, 0], sizes = [2, 5, 8], strides = [1, 1, 1]} : vector<2x8x8xf32> to vector<2x5x8xf32>
    %27 = vector.extract_strided_slice %24 {offsets = [0, 2, 0], sizes = [2, 5, 8], strides = [1, 1, 1]} : vector<2x8x8xf32> to vector<2x5x8xf32>
    %28 = vector.extract_strided_slice %24 {offsets = [0, 3, 0], sizes = [2, 5, 8], strides = [1, 1, 1]} : vector<2x8x8xf32> to vector<2x5x8xf32>
    %29 = tpu.concatenate %25, %26, %27, %28 in 2 : vector<2x5x8xf32>, vector<2x5x8xf32>, vector<2x5x8xf32>, vector<2x5x8xf32> -> vector<2x5x32xf32>
    %c0_11 = arith.constant 0 : index
    %c0_12 = arith.constant 0 : index
    %30 = vector.load %arg5[%c0_11, %c0_12] : memref<32x2xf32, #tpu.memory_space<vmem>>, vector<32x2xf32>
    %31 = vector.shape_cast %30 : vector<32x2xf32> to vector<1x32x2xf32>
    %32 = vector.shape_cast %31 : vector<1x32x2xf32> to vector<1x32x2xf32>
    %33 = vector.broadcast %32 : vector<1x32x2xf32> to vector<2x32x2xf32>
    "tpu.trace_start"() <{level = 10 : i32, message = "btf,bfn->btn"}> : () -> ()
    %cst_13 = arith.constant dense<0.000000e+00> : vector<2x5x2xf32>
    %34 = tpu.matmul %29, %33, %cst_13 {dimension_numbers = #tpu.dot_dimension_numbers<[2], [1], [1], [2], [0, 0, 0, 1, 1, 2], [0], [0]>} : vector<2x5x32xf32>, vector<2x32x2xf32>, vector<2x5x2xf32> -> vector<2x5x2xf32>
    "tpu.trace_stop"() : () -> ()
    %c0_14 = arith.constant 0 : index
    %c0_15 = arith.constant 0 : index
    %35 = vector.load %arg6[%c0_14, %c0_15] : memref<1x2xf32, #tpu.memory_space<vmem>>, vector<1x2xf32>
    %36 = vector.shape_cast %35 : vector<1x2xf32> to vector<1x1x2xf32>
    %37 = vector.broadcast %36 : vector<1x1x2xf32> to vector<2x5x2xf32>
    %38 = arith.addf %34, %37 : vector<2x5x2xf32>
    %cst_16 = arith.constant dense<0xFF800000> : vector<2x5xf32>
    %39 = vector.multi_reduction <maximumf>, %38, %cst_16 [2] : vector<2x5x2xf32> to vector<2x5xf32>
    %40 = vector.shape_cast %39 : vector<2x5xf32> to vector<2x5x1xf32>
    %41 = vector.broadcast %40 : vector<2x5x1xf32> to vector<2x5x2xf32>
    %42 = arith.subf %38, %41 : vector<2x5x2xf32>
    %43 = math.exp %42 : vector<2x5x2xf32>
    %cst_17 = arith.constant dense<0.000000e+00> : vector<2x5xf32>
    %44 = vector.multi_reduction <add>, %43, %cst_17 [2] : vector<2x5x2xf32> to vector<2x5xf32>
    %45 = vector.shape_cast %44 : vector<2x5xf32> to vector<2x5x1xf32>
    %46 = math.log %45 : vector<2x5x1xf32>
    %47 = arith.addf %40, %46 : vector<2x5x1xf32>
    %48 = vector.broadcast %47 : vector<2x5x1xf32> to vector<2x5x2xf32>
    %49 = arith.subf %38, %48 : vector<2x5x2xf32>
    %c0_18 = arith.constant 0 : index
    %c0_19 = arith.constant 0 : index
    %c0_20 = arith.constant 0 : index
    %50 = vector.load %arg7[%c0_18, %c0_19, %c0_20] : memref<2x5x2xf32, #tpu.memory_space<vmem>>, vector<2x5x2xf32>
    tpu.vector_store %arg7[%c0_18, %c0_19, %c0_20], %49 {strides = array<i32>} : memref<2x5x2xf32, #tpu.memory_space<vmem>>, vector<2x5x2xf32>,
    return
  }
  func.func @transform_0(%arg0: i32) -> (i32, i32, i32) {
    %c0_i32 = arith.constant 0 : i32
    %c0_i32_0 = arith.constant 0 : i32
    %c0_i32_1 = arith.constant 0 : i32
    return %arg0, %c0_i32, %c0_i32_0 : i32, i32, i32
  }
  func.func @transform_1(%arg0: i32) -> (i32, i32) {
    %c0_i32 = arith.constant 0 : i32
    %c0_i32_0 = arith.constant 0 : i32
    %c0_i32_1 = arith.constant 0 : i32
    return %c0_i32, %c0_i32_0 : i32, i32
  }
  func.func @transform_2(%arg0: i32) -> (i32, i32) {
    %c0_i32 = arith.constant 0 : i32
    %c0_i32_0 = arith.constant 0 : i32
    %c0_i32_1 = arith.constant 0 : i32
    return %c0_i32, %c0_i32_0 : i32, i32
  }
  func.func @transform_3(%arg0: i32) -> (i32, i32) {
    %c0_i32 = arith.constant 0 : i32
    %c0_i32_0 = arith.constant 0 : i32
    %c0_i32_1 = arith.constant 0 : i32
    return %c0_i32, %c0_i32_0 : i32, i32
  }
  func.func @transform_4(%arg0: i32) -> (i32, i32) {
    %c0_i32 = arith.constant 0 : i32
    %c0_i32_0 = arith.constant 0 : i32
    %c0_i32_1 = arith.constant 0 : i32
    return %c0_i32, %c0_i32_0 : i32, i32
  }
  func.func @transform_5(%arg0: i32) -> (i32, i32) {
    %c0_i32 = arith.constant 0 : i32
    %c0_i32_0 = arith.constant 0 : i32
    %c0_i32_1 = arith.constant 0 : i32
    return %c0_i32, %c0_i32_0 : i32, i32
  }
  func.func @transform_6(%arg0: i32) -> (i32, i32, i32) {
    %c0_i32 = arith.constant 0 : i32
    %c0_i32_0 = arith.constant 0 : i32
    %c0_i32_1 = arith.constant 0 : i32
    return %arg0, %c0_i32, %c0_i32_0 : i32, i32, i32
  }
}

</mosaic_0001>

<bundles_post_ra>
// kernel: tpu_custom_call.1
= control target key start
LH: loop header
LB: loop body
LE: loop exit
PB: predicated region body
PF: predicated region fallthrough
CT: control target
= control target key end

     0   :  { %s1292_s21 = smov 0   ;;  %s1539_s0 = inlined_call_operand.vmem [shape: f32[4,40,4], index: 0, kind: input, shape index: {}]   ;;  %s1540_s1 = inlined_call_operand.vmem [shape: f32[20,8], index: 1, kind: input, shape index: {}]   ;;  %s1541_s2 = inlined_call_operand.vmem [shape: f32[1,8], index: 2, kind: input, shape index: {}]   ;;  %s1542_s3 = inlined_call_operand.vmem [shape: f32[8,32], index: 3, kind: input, shape index: {}]   ;;  %s1543_s4 = inlined_call_operand.vmem [shape: f32[32,2], index: 4, kind: input, shape index: {}]   ;;  %s1544_s5 = inlined_call_operand.vmem [shape: f32[1,2], index: 5, kind: input, shape index: {}]   ;;  %s1545_s6 = inlined_call_operand.vmem [shape: f32[4,5,2], index: 6, kind: output, shape index: {}]  }
   0x1 LB: > { %s1065_s22 = sadd.s32 4294967295, %s1247_s21   ;;  %p1069_p0 = scmp.ge.s32.totalorder %s1247_s21, 1  ;;  %s1247_s21 = sphi %s1292_s21, %s16_s21  }
   0x2   : > { %p214_p1 = scmp.lt.s32.totalorder %s1247_s21, 3 }
   0x4   : > { %p215_p2 = pnand %p1069_p0, %p214_p1 }
   0x5   : > { %s1070_s23 = sshll.u32 (!%p215_p2), %s1065_s22, 1  ;;  %v486_v0 = vld [vmem:[%s1540_s1] sm:$0xff] (!%p215_p2)  ;;  %v487_v1 = vld [vmem:[%s1540_s1 + $0x8] sm:$0xff] (!%p215_p2)  ;;  %vm321_vm0 = vcmask (!%p215_p2), 1045504   ;;  %vm278_vm1 = vcmask (!%p215_p2), 1046528   ;;  %s1249_s8 = smov (!%p215_p2), 8  }
   0x6   : > { %218 = sbr.rel (%p215_p2) target bundleno = 1308 (0x51c), region = 44  ;;  %p246_p3 = scmp.lt.s32.totalorder (!%p215_p2), %s1070_s23, 3  ;;  %v1184_v5 = vpack.c.bf16 (!%p215_p2), %v487_v1, %v486_v0  ;;  %vm407_vm2 = vcmask (!%p215_p2), 1043456   ;;  %v488_v15 = vld [vmem:[%s1540_s1 + $0x10] sm:$0xf] (!%p215_p2)  ;;  %vm364_vm3 = vcmask (!%p215_p2), 1044480  }
   0x7   : > { %s1250_s9 = smov (!%p215_p2), 4   ;;  %s1251_s12 = smov (!%p215_p2), 12   ;;  %vm450_vm4 = vcmask (!%p215_p2), 31744   ;;  %vm459_vm5 = vcmask (!%p215_p2), 64512   ;;  %vm468_vm6 = vcmask (!%p215_p2), 97280   ;;  %vm477_vm7 = vcmask (!%p215_p2), 130048  }
   0x8   : > { %1185 = vmatprep.subr.bf16.mxu0 (!%p215_p2), %v1184_v5  ;;  %s1252_s13 = smov (!%p215_p2), 16   ;;  %vm496_vm8 = vcmask (!%p215_p2), 162816   ;;  %vm1254_vm9 = vmmov (!%p215_p2), 0   ;;  %vm638_vm10 = vcmask (!%p215_p2), 261120   ;;  %s1256_s28 = smov (!%p215_p2), 24   ;;  %vm820_vm11 = vcmask (!%p215_p2), 195584  }
   0x9   : > { %1187 = vmatpush3.bf16.msra.mxu0 (!%p215_p2), %v1184_v5  ;;  %vm980_vm12 = vcmask (!%p215_p2), 12288  }
   0xa   : > { %1126 = vmatprep.subr.msk.mxu0 (!%p215_p2), %vm407_vm2, %v488_v15 }
   0xd   : > { %s1547_s23 = smov (!%p246_p3, %s1070_s23), 3  ;;  %1127 = vmatpush3.msk.msra.mxu0 %vm407_vm2, %v488_v15 }
   0xe   : > { %s1212_s24 = smul.u32 40, %s1547_s23  ;;  %s1073_s7 = sshll.u32 %s1547_s23, 3 }
   0xf   : > { %s256_s10 = scalar_lea.vmem %s1545_s6, %s1073_s7 }
  0x10   : > { %s1306_s27 = scalar_lea.vmem %s1539_s0, %s1212_s24 }
  0x11   : > { %v1315_v2 = vld [vmem:[%s1306_s27] sm:$0xff]  ;;  %v1318_v3 = vld [vmem:[%s1306_s27 + $0x8] sm:$0xff]  ;;  %v1321_v4 = vld [vmem:[%s1306_s27 + $0x10] sm:$0xff] }
  0x12   : > { %v322_v6 = vrot.slane %v1315_v2, 2  ;;  %v323_v7 = vrot.slane %v1318_v3, 2  ;;  %v279_v8 = vrot.slane %v1315_v2, 1  ;;  %v280_v9 = vrot.slane %v1318_v3, 1  ;;  %v1342_v20 = vld [vmem:[%s1306_s27 + $0x18] sm:$0xff]  ;;  %v262_v26 = vld [vmem:[%s1306_s27 + $0x20] sm:$0xff] }
  0x13   : > { %v325_v10 = vrot.slane %v1321_v4, 2  ;;  %v282_v11 = vrot.slane %v1321_v4, 1  ;;  %v366_v14 = vrot.slane %v1318_v3, 3  ;;  %v368_v18 = vrot.slane %v1321_v4, 3  ;;  %v1370_v39 = vld [vmem:[%s1306_s27 + $0x28] sm:$0xff]  ;;  %v1373_v40 = vld [vmem:[%s1306_s27 + $0x30] sm:$0xff] }
  0x14   : > { %v324_v12 = vsel %vm321_vm0, %v322_v6, %v323_v7  ;;  %v281_v13 = vsel %vm278_vm1, %v279_v8, %v280_v9  ;;  %v365_v19 = vrot.slane %v1315_v2, 3  ;;  %v284_v21 = vrot.slane %v1342_v20, 1  ;;  %v1383_v46 = vld [vmem:[%s1306_s27 + $0x38] sm:$0xff]  ;;  %v1405_v61 = vld [vmem:[%s1306_s27 + $0x40] sm:$0xff]  ;;  %v267_v6 = vld [vmem:[%s1306_s27 + $0x48] sm:$0xff] }
  0x15   : > { %340 = vrot.lane.b32.xlu1 %v324_v12, %s1249_s8  ;;  %297 = vrot.lane.b32.xlu0 %v281_v13, %s1250_s9  ;;  %v326_v16 = vsel %vm321_vm0, %v323_v7, %v325_v10  ;;  %v283_v17 = vsel %vm278_vm1, %v280_v9, %v282_v11  ;;  %v369_v22 = vsel %vm364_vm3, %v366_v14, %v368_v18  ;;  %v408_v24 = vrot.slane %v1315_v2, 4 }
  0x16   : > { %v367_v23 = vsel %vm364_vm3, %v365_v19, %v366_v14  ;;  %v409_v25 = vrot.slane %v1318_v3, 4  ;;  %v285_v27 = vsel %vm278_vm1, %v282_v11, %v284_v21  ;;  %v286_v29 = vrot.slane %v262_v26, 1 }
  0x17   : > { %v411_v30 = vrot.slane %v1321_v4, 4  ;;  %v327_v33 = vrot.slane %v1342_v20, 2  ;;  %v329_v34 = vrot.slane %v262_v26, 2  ;;  %v370_v37 = vrot.slane %v1342_v20, 3 }
  0x18   : > { %v410_v28 = vsel %vm407_vm2, %v408_v24, %v409_v25  ;;  %v287_v31 = vsel %vm278_vm1, %v284_v21, %v286_v29  ;;  %v372_v38 = vrot.slane %v262_v26, 3  ;;  %v288_v41 = vrot.slane %v1370_v39, 1 }
  0x19   : > { %342 = vrot.lane.b32.xlu1 %v326_v16, %s1249_s8  ;;  %299 = vrot.lane.b32.xlu0 %v283_v17, %s1250_s9  ;;  %v412_v32 = vsel %vm407_vm2, %v409_v25, %v411_v30  ;;  %v330_v35 = vsel %vm321_vm0, %v327_v33, %v329_v34  ;;  %v328_v36 = vsel %vm321_vm0, %v325_v10, %v327_v33  ;;  %v289_v44 = vrot.slane %v1373_v40, 1 }
  0x1a   : > { %v373_v42 = vsel %vm364_vm3, %v370_v37, %v372_v38  ;;  %v371_v43 = vsel %vm364_vm3, %v368_v18, %v370_v37  ;;  %v413_v45 = vrot.slane %v1342_v20, 4  ;;  %v291_v49 = vrot.slane %v1383_v46, 1 }
  0x1b   : > { %v290_v47 = vsel %vm278_vm1, %v288_v41, %v289_v44  ;;  %v415_v50 = vrot.slane %v262_v26, 4  ;;  %v332_v51 = vrot.slane %v1373_v40, 2  ;;  %v334_v54 = vrot.slane %v1383_v46, 2 }
  0x1c   : > { %v414_v48 = vsel %vm407_vm2, %v411_v30, %v413_v45  ;;  %v292_v52 = vsel %vm278_vm1, %v289_v44, %v291_v49  ;;  %v331_v55 = vrot.slane %v1370_v39, 2  ;;  %v375_v56 = vrot.slane %v1373_v40, 3 }
  0x1d   : > { %385 = vrot.lane.b32.xlu1 %v369_v22, %s1251_s12  ;;  %383 = vrot.lane.b32.xlu0 %v367_v23, %s1251_s12  ;;  %v416_v53 = vsel %vm407_vm2, %v413_v45, %v415_v50  ;;  %v335_v57 = vsel %vm321_vm0, %v332_v51, %v334_v54  ;;  %v377_v59 = vrot.slane %v1383_v46, 3  ;;  %v374_v60 = vrot.slane %v1370_v39, 3 }
  0x1e   : > { %v333_v58 = vsel %vm321_vm0, %v331_v55, %v332_v51  ;;  %v293_v62 = vrot.slane %v1405_v61, 1  ;;  %v417_v1 = vrot.slane %v1370_v39, 4  ;;  %v418_v5 = vrot.slane %v1373_v40, 4 }
  0x1f   : > { %v378_v63 = vsel %vm364_vm3, %v375_v56, %v377_v59  ;;  %v376_v0 = vsel %vm364_vm3, %v374_v60, %v375_v56  ;;  %v295_v9 = vrot.slane %v267_v6, 1  ;;  %v420_v10 = vrot.slane %v1383_v46, 4 }
  0x20   : > { %v294_v7 = vsel %vm278_vm1, %v291_v49, %v293_v62  ;;  %v419_v8 = vsel %vm407_vm2, %v417_v1, %v418_v5  ;;  %v336_v13 = vrot.slane %v1405_v61, 2  ;;  %v338_v14 = vrot.slane %v267_v6, 2 }
  0x21   : > { %301 = vrot.lane.b32.xlu1 %v285_v27, %s1250_s9  ;;  %426 = vrot.lane.b32.xlu0 %v410_v28, %s1252_s13  ;;  %v296_v11 = vsel %vm278_vm1, %v293_v62, %v295_v9  ;;  %v421_v12 = vsel %vm407_vm2, %v418_v5, %v420_v10  ;;  %v379_v17 = vrot.slane %v1405_v61, 3  ;;  %v381_v18 = vrot.slane %v267_v6, 3 }
  0x22   : > { %v339_v15 = vsel %vm321_vm0, %v336_v13, %v338_v14  ;;  %v337_v16 = vsel %vm321_vm0, %v334_v54, %v336_v13  ;;  %v422_v22 = vrot.slane %v1405_v61, 4  ;;  %v424_v23 = vrot.slane %v267_v6, 4 }
  0x23   : > { %v382_v19 = vsel %vm364_vm3, %v379_v17, %v381_v18  ;;  %v380_v21 = vsel %vm364_vm3, %v377_v59, %v379_v17 }
  0x24   : > { %v425_v24 = vsel %vm407_vm2, %v422_v22, %v424_v23  ;;  %v423_v25 = vsel %vm407_vm2, %v420_v10, %v422_v22 }
  0x25   : > { %303 = vrot.lane.b32.xlu1 %v287_v31, %s1250_s9  ;;  %428 = vrot.lane.b32.xlu0 %v412_v32, %s1252_s13 }
  0x29   : > { %346 = vrot.lane.b32.xlu1 %v330_v35, %s1249_s8  ;;  %344 = vrot.lane.b32.xlu0 %v328_v36, %s1249_s8 }
  0x2d   : > { %389 = vrot.lane.b32.xlu1 %v373_v42, %s1251_s12  ;;  %387 = vrot.lane.b32.xlu0 %v371_v43, %s1251_s12 }
  0x31   : > { %305 = vrot.lane.b32.xlu1 %v290_v47, %s1250_s9  ;;  %430 = vrot.lane.b32.xlu0 %v414_v48, %s1252_s13 }
  0x35   : > { %307 = vrot.lane.b32.xlu1 %v292_v52, %s1250_s9  ;;  %432 = vrot.lane.b32.xlu0 %v416_v53, %s1252_s13 }
  0x39   : > { %350 = vrot.lane.b32.xlu1 %v335_v57, %s1249_s8  ;;  %348 = vrot.lane.b32.xlu0 %v333_v58, %s1249_s8 }
  0x3d   : > { %393 = vrot.lane.b32.xlu1 %v378_v63, %s1251_s12  ;;  %391 = vrot.lane.b32.xlu0 %v376_v0, %s1251_s12 }
  0x41   : > { %309 = vrot.lane.b32.xlu1 %v294_v7, %s1250_s9  ;;  %434 = vrot.lane.b32.xlu0 %v419_v8, %s1252_s13 }
  0x45   : > { %311 = vrot.lane.b32.xlu1 %v296_v11, %s1250_s9  ;;  %436 = vrot.lane.b32.xlu0 %v421_v12, %s1252_s13 }
  0x49   : > { %354 = vrot.lane.b32.xlu1 %v339_v15, %s1249_s8  ;;  %352 = vrot.lane.b32.xlu0 %v337_v16, %s1249_s8 }
  0x4d   : > { %397 = vrot.lane.b32.xlu1 %v382_v19, %s1251_s12  ;;  %395 = vrot.lane.b32.xlu0 %v380_v21, %s1251_s12 }
  0x51   : > { %440 = vrot.lane.b32.xlu1 %v425_v24, %s1252_s13  ;;  %438 = vrot.lane.b32.xlu0 %v423_v25, %s1252_s13 }
  0x87   : > { %v341_v26 = vpop.permute.xlu1 %340  ;;  %v298_v27 = vpop.permute.xlu0 %297 }
  0x88   : > { %v451_v30 = vsel %vm450_vm4, %v1315_v2, %v298_v27 }
  0x89   : > { %v460_v33 = vsel %vm459_vm5, %v451_v30, %v341_v26 }
  0x8b   : > { %v343_v28 = vpop.permute.xlu1 %342  ;;  %v300_v29 = vpop.permute.xlu0 %299 }
  0x8c   : > { %v452_v34 = vsel %vm450_vm4, %v1318_v3, %v300_v29 }
  0x8d   : > { %v461_v2 = vsel %vm459_vm5, %v452_v34, %v343_v28  ;;  %v1074_v28 = vld [vmem:[%s1541_s2] ss:$0 sm:$0xff] }
  0x8f   : > { %v386_v31 = vpop.permute.xlu1 %385  ;;  %v384_v32 = vpop.permute.xlu0 %383 }
  0x90   : > { %v469_v35 = vsel %vm468_vm6, %v460_v33, %v384_v32  ;;  %v470_v41 = vsel %vm468_vm6, %v461_v2, %v386_v31 }
  0x93   : > { %v302_v36 = vpop.permute.xlu1 %301  ;;  %v427_v37 = vpop.permute.xlu0 %426 }
  0x94   : > { %v478_v38 = vsel %vm477_vm7, %v469_v35, %v427_v37  ;;  %v453_v49 = vsel %vm450_vm4, %v1321_v4, %v302_v36 }
  0x95   : > { %1128 = vmatprep.mubr.msk.f32.mxu0 %vm496_vm8, %v478_v38 }
  0x97   : > { %v304_v42 = vpop.permute.xlu1 %303  ;;  %v429_v43 = vpop.permute.xlu0 %428 }
  0x98   : > { %v479_v44 = vsel %vm477_vm7, %v470_v41, %v429_v43  ;;  %v454_v55 = vsel %vm450_vm4, %v1342_v20, %v304_v42 }
  0x99   : > { %1129 = vmatmul.mubr.msk.f32.vlgmr.msra.gmra.mrb[0].mxu0 %vm496_vm8, %v479_v44  ;;  %v637_v44 = vld [vmem:[%s1542_s3] sm:$0xff] }
  0x9b   : > { %v347_v45 = vpop.permute.xlu1 %346  ;;  %v345_v3 = vpop.permute.xlu0 %344 }
  0x9c   : > { %v462_v50 = vsel %vm459_vm5, %v453_v49, %v345_v3  ;;  %v463_v56 = vsel %vm459_vm5, %v454_v55, %v347_v45 }
  0x9f   : > { %v390_v47 = vpop.permute.xlu1 %389  ;;  %v388_v48 = vpop.permute.xlu0 %387 }
  0xa0   : > { %v471_v51 = vsel %vm468_vm6, %v462_v50, %v388_v48  ;;  %v472_v57 = vsel %vm468_vm6, %v463_v56, %v390_v47 }
  0xa3   : > { %v306_v52 = vpop.permute.xlu1 %305  ;;  %v431_v53 = vpop.permute.xlu0 %430 }
  0xa4   : > { %v480_v54 = vsel %vm477_vm7, %v471_v51, %v431_v53  ;;  %v455_v1 = vsel %vm450_vm4, %v1370_v39, %v306_v52 }
  0xa5   : > { %1131 = vmatprep.mubr.msk.f32.mxu0 %vm496_vm8, %v480_v54 }
  0xa7   : > { %v308_v58 = vpop.permute.xlu1 %307  ;;  %v433_v59 = vpop.permute.xlu0 %432 }
  0xa8   : > { %v481_v4 = vsel %vm477_vm7, %v472_v57, %v433_v59  ;;  %v456_v9 = vsel %vm450_vm4, %v1373_v40, %v308_v58 }
  0xa9   : > { %1132 = vmatmul.mubr.msk.f32.gmra.mrb[2].mxu0 %vm496_vm8, %v481_v4 }
  0xab   : > { %v351_v60 = vpop.permute.xlu1 %350  ;;  %v349_v62 = vpop.permute.xlu0 %348 }
  0xac   : > { %v464_v20 = vsel %vm459_vm5, %v455_v1, %v349_v62  ;;  %v465_v10 = vsel %vm459_vm5, %v456_v9, %v351_v60 }
  0xaf   : > { %v394_v63 = vpop.permute.xlu1 %393  ;;  %v392_v0 = vpop.permute.xlu0 %391 }
  0xb0   : > { %v473_v5 = vsel %vm468_vm6, %v464_v20, %v392_v0  ;;  %v474_v11 = vsel %vm468_vm6, %v465_v10, %v394_v63  ;;  %v823_v63 = vld [vmem:[%s1543_s4] sm:$0xff]  ;;  %v824_v0 = vld [vmem:[%s1543_s4 + $0x8] sm:$0xff]  ;;  %v825_v20 = vld [vmem:[%s1543_s4 + $0x10] sm:$0xff] }
  0xb1   : > { %v1201_v1 = vpack.c.bf16 %v824_v0, %v823_v63 }
  0xb3   : > { %v310_v6 = vpop.permute.xlu1 %309  ;;  %v435_v7 = vpop.permute.xlu0 %434 }
  0xb4   : > { %v482_v8 = vsel %vm477_vm7, %v473_v5, %v435_v7  ;;  %v457_v18 = vsel %vm450_vm4, %v1383_v46, %v310_v6  ;;  %v1253_v46 = vmov 0.0|0.0   ;;  %v826_v5 = vld [vmem:[%s1543_s4 + $0x18] sm:$0xff] }
  0xb5   : > { %1134 = vmatprep.mubr.msk.f32.mxu0 %vm496_vm8, %v482_v8  ;;  %1188 = vmatprep.subr.bf16.mxu1 %v1253_v46  ;;  %v1204_v6 = vpack.c.bf16 %v826_v5, %v825_v20 }
  0xb6   : > { %1200 = vmatprep.subr.bf16.mxu0 %v1253_v46 }
  0xb7   : > { %v312_v12 = vpop.permute.xlu1 %311  ;;  %v437_v13 = vpop.permute.xlu0 %436  ;;  %1202 = vmatpush3.bf16.msra.mxu0 %v1201_v1 }
  0xb8   : > { %v483_v39 = vsel %vm477_vm7, %v474_v11, %v437_v13  ;;  %v458_v40 = vsel %vm450_vm4, %v1405_v61, %v312_v12  ;;  %v1255_v61 = vmov 0.0   ;;  %1203 = vmatprep.subr.bf16.mxu0 %v1253_v46 }
  0xb9   : > { %1135 = vmatmul.mubr.msk.f32.gmra.mrb[4].mxu0 %vm496_vm8, %v483_v39  ;;  %1148 = vmatprep.mubr.msk.f32.mxu1 %vm1254_vm9, %v1255_v61 }
  0xbb   : > { %v355_v14 = vpop.permute.xlu1 %354  ;;  %v353_v15 = vpop.permute.xlu0 %352  ;;  %1205 = vmatpush3.bf16.msra.mxu0 %v1204_v6 }
  0xbc   : > { %v467_v19 = vsel %vm459_vm5, %v458_v40, %v355_v14  ;;  %v466_v21 = vsel %vm459_vm5, %v457_v18, %v353_v15 }
  0xbf   : > { %v398_v16 = vpop.permute.xlu1 %397  ;;  %v396_v17 = vpop.permute.xlu0 %395 }
  0xc0   : > { %v476_v22 = vsel %vm468_vm6, %v467_v19, %v398_v16  ;;  %v475_v23 = vsel %vm468_vm6, %v466_v21, %v396_v17 }
  0xc3   : > { %v441_v24 = vpop.permute.xlu1 %440  ;;  %v439_v25 = vpop.permute.xlu0 %438 }
  0xc4   : > { %v485_v26 = vsel %vm477_vm7, %v476_v22, %v441_v24  ;;  %v484_v27 = vsel %vm477_vm7, %v475_v23, %v439_v25 }
  0xc5   : > { %1137 = vmatprep.mubr.msk.f32.mxu0 %vm496_vm8, %v484_v27 }
  0xc6   : > { %1138 = vmatmul.mubr.msk.f32.gmra.mrb[6].mxu0 %vm496_vm8, %v485_v26 }
  0xc7   : > { %1170 = vmatprep.mubr.msk.f32.mxu0 %vm1254_vm9, %v1255_v61 }
 0x16c   : > { %v1130_v29 = vpop.f32.mrb[0].mxu0 }
 0x16d   : > { %v596_v30 = vadd.f32 %v1130_v29, %v1074_v28  ;;  %v590_v31 = vpop.f32.mrb[1].mxu0 }
 0x16e   : > { %v591_v32 = vadd.f32 %v1074_v28, %v590_v31 }
 0x16f   : > { %v630_v33 = vmul.f32 %v596_v30, %v596_v30  ;;  %v1086_v30 = vld [vmem:[%s1544_s5] ss:$0 sm:$0xff] }
 0x170   : > { %v629_v34 = vmul.f32 %v591_v32, %v591_v32 }
 0x172   : > { %v1189_v35 = vpack.c.bf16 %v630_v33, %v629_v34 }
 0x174   : > { %1190 = vmatpush3.bf16.msra.mxu1 %v1189_v35 }
 0x175   : > { %1191 = vmatprep.subr.bf16.mxu1 %v1253_v46 }
 0x17c   : > { %v1133_v36 = vpop.f32.mrb[2].mxu0 }
 0x17d   : > { %v606_v37 = vadd.f32 %v1133_v36, %v1074_v28  ;;  %v600_v38 = vpop.f32.mrb[3].mxu0 }
 0x17e   : > { %v601_v2 = vadd.f32 %v1074_v28, %v600_v38 }
 0x17f   : > { %v632_v41 = vmul.f32 %v606_v37, %v606_v37 }
 0x180   : > { %v631_v42 = vmul.f32 %v601_v2, %v601_v2 }
 0x182   : > { %v1192_v43 = vpack.c.bf16 %v632_v41, %v631_v42 }
 0x184   : > { %1193 = vmatpush3.bf16.msra.mxu1 %v1192_v43 }
 0x185   : > { %1194 = vmatprep.subr.bf16.mxu1 %v1253_v46 }
 0x187   : > { %1149 = vmatmul.mubr.msk.f32.vlgmr.msra.gmra.mrb[0].mxu1 %vm638_vm10, %v637_v44 }
 0x188   : > { %1159 = vmatprep.mubr.msk.f32.mxu1 %vm1254_vm9, %v1255_v61 }
 0x18c   : > { %v1136_v45 = vpop.f32.mrb[4].mxu0 }
 0x18d   : > { %v616_v3 = vadd.f32 %v1136_v45, %v1074_v28  ;;  %v610_v47 = vpop.f32.mrb[5].mxu0 }
 0x18e   : > { %v611_v48 = vadd.f32 %v1074_v28, %v610_v47 }
 0x18f   : > { %v634_v49 = vmul.f32 %v616_v3, %v616_v3 }
 0x190   : > { %v633_v50 = vmul.f32 %v611_v48, %v611_v48 }
 0x192   : > { %v1195_v51 = vpack.c.bf16 %v634_v49, %v633_v50 }
 0x194   : > { %1196 = vmatpush3.bf16.msra.mxu1 %v1195_v51 }
 0x195   : > { %1197 = vmatprep.subr.bf16.mxu1 %v1253_v46 }
 0x199   : > { %v1139_v52 = vpop.f32.mrb[6].mxu0 }
 0x19a   : > { %v626_v53 = vadd.f32 %v1139_v52, %v1074_v28  ;;  %v620_v54 = vpop.f32.mrb[7].mxu0 }
 0x19b   : > { %v621_v55 = vadd.f32 %v1074_v28, %v620_v54 }
 0x19c   : > { %v636_v56 = vmul.f32 %v626_v53, %v626_v53 }
 0x19d   : > { %v635_v57 = vmul.f32 %v621_v55, %v621_v55 }
 0x19f   : > { %v1198_v58 = vpack.c.bf16 %v636_v56, %v635_v57 }
 0x1a1   : > { %1199 = vmatpush3.bf16.msra.mxu1 %v1198_v58 }
 0x1a2   : > { %1206 = vmatprep.subr.bf16.mxu1 %v1253_v46 }
 0x1a4   : > { %1160 = vmatmul.mubr.msk.f32.vlgmr.msra.gmra.mrb[2].mxu1 %vm638_vm10, %v637_v44 }
 0x1a5   : > { %1181 = vmatprep.mubr.msk.f32.mxu1 %vm1254_vm9, %v1255_v61  ;;  %1208 = vmatpush3.bf16.msra.mxu1 %v1201_v1 }
 0x1a6   : > { %1209 = vmatprep.subr.bf16.mxu1 %v1253_v46 }
 0x1a9   : > { %1211 = vmatpush3.bf16.msra.mxu1 %v1204_v6 }
 0x25a   : > { %v708_v59 = vpop.f32.mrb[0].mxu1 }
 0x25b   : > { %v782_v4 = vmul.f32 0.16666667, %v708_v59  ;;  %v1150_v60 = vpop.f32.mrb[1].mxu1 }
 0x25d   : > { %v784_v62 = vmax.f32 %v782_v4, 1e-06 }
 0x25f   : > { %1229 = vlog2.f32 %v784_v62 }
 0x269   : > { %v1230_v7 = vpop.eup %1229 }
 0x26a   : > { %v787_v8 = vmul.f32 0.6931472, %v1230_v7 }
 0x26c   : > { %v792_v9 = vrot.slane %v787_v8, 1  ;;  %v800_v10 = vrot.slane %v787_v8, 2  ;;  %v808_v11 = vrot.slane %v787_v8, 3 }
 0x26e   : > { %794 = vrot.lane.b32.xlu0 %v792_v9, %s1249_s8 }
 0x272   : > { %802 = vrot.lane.b32.xlu0 %v800_v10, %s1252_s13 }
 0x276   : > { %810 = vrot.lane.b32.xlu0 %v808_v11, %s1256_s28 }
 0x277   : > { %v778_v12 = vpop.f32.mrb[2].mxu1 }
 0x278   : > { %v783_v13 = vmul.f32 0.16666667, %v778_v12  ;;  %v1161_v39 = vpop.f32.mrb[3].mxu1 }
 0x27a   : > { %v785_v14 = vmax.f32 %v783_v13, 1e-06 }
 0x27c   : > { %1231 = vlog2.f32 %v785_v14 }
 0x286   : > { %v1232_v15 = vpop.eup %1231 }
 0x287   : > { %v789_v16 = vmul.f32 0.6931472, %v1232_v15 }
 0x289   : > { %v793_v17 = vrot.slane %v789_v16, 1  ;;  %v801_v18 = vrot.slane %v789_v16, 2  ;;  %v809_v40 = vrot.slane %v789_v16, 3 }
 0x28b   : > { %796 = vrot.lane.b32.xlu1 %v793_v17, %s1249_s8 }
 0x28f   : > { %804 = vrot.lane.b32.xlu1 %v801_v18, %s1252_s13 }
 0x293   : > { %812 = vrot.lane.b32.xlu1 %v809_v40, %s1256_s28 }
 0x2e0   : > { %v795_v19 = vpop.permute.xlu0 %794 }
 0x2e1   : > { %v816_v22 = vsel %vm459_vm5, %v787_v8, %v795_v19 }
 0x2e4   : > { %v803_v21 = vpop.permute.xlu0 %802 }
 0x2e5   : > { %v818_v23 = vsel %vm477_vm7, %v816_v22, %v803_v21 }
 0x2e8   : > { %v811_v24 = vpop.permute.xlu0 %810 }
 0x2e9   : > { %v821_v25 = vsel %vm820_vm11, %v818_v23, %v811_v24 }
 0x2ea   : > { %1171 = vmatmul.mubr.msk.f32.vlgmr.msra.gmra.mrb[8].mxu0 %vm638_vm10, %v821_v25 }
 0x2fd   : > { %v797_v26 = vpop.permute.xlu1 %796 }
 0x2fe   : > { %v817_v46 = vsel %vm459_vm5, %v789_v16, %v797_v26 }
 0x301   : > { %v805_v27 = vpop.permute.xlu1 %804 }
 0x302   : > { %v819_v61 = vsel %vm477_vm7, %v817_v46, %v805_v27 }
 0x305   : > { %v813_v28 = vpop.permute.xlu1 %812 }
 0x306   : > { %v822_v29 = vsel %vm820_vm11, %v819_v61, %v813_v28 }
 0x307   : > { %1182 = vmatmul.mubr.msk.f32.vlgmr.msra.gmra.mrb[4].mxu1 %vm638_vm10, %v822_v29 }
 0x3bd   : > { %v903_v31 = vpop.f32.mrb[8].mxu0 }
 0x3be   : > { %v904_v32 = vadd.f32 %v1086_v30, %v903_v31  ;;  %v1172_v33 = vpop.f32.mrb[9].mxu0 }
 0x3c0   : > { %v981_v34 = vsel %vm980_vm12, %v904_v32, -inf }
 0x3c1   : > { %982 = vmax.xlane.f32.xlu0 %v981_v34 }
 0x3da   : > { %v976_v35 = vpop.f32.mrb[4].mxu1 }
 0x3db   : > { %v977_v36 = vadd.f32 %v1086_v30, %v976_v35  ;;  %v1183_v37 = vpop.f32.mrb[5].mxu1 }
 0x3dd   : > { %v984_v38 = vsel %vm980_vm12, %v977_v36, -inf }
 0x3de   : > { %985 = vmax.xlane.f32.xlu1 %v984_v38 }
 0x44e   : > { %v983_v2 = vpop.xlane.xlu0 %982 }
 0x44f   : > { %v987_v41 = vsub.f32 %v904_v32, %v983_v2 }
 0x451   : > { %v989_v42 = vmul.f32 1.442695, %v987_v41 }
 0x453   : > { %1233 = vpow2.f32 %v989_v42 }
 0x45d   : > { %v1234_v43 = vpop.eup %1233 }
 0x45e   : > { %v993_v44 = vsel %vm980_vm12, %v1234_v43, 0.0 }
 0x45f   : > { %994 = vadd.xlane.f32.xlu0 %v993_v44 }
 0x46b   : > { %v986_v45 = vpop.xlane.xlu1 %985 }
 0x46c   : > { %v988_v3 = vsub.f32 %v977_v36, %v986_v45 }
 0x46e   : > { %v991_v47 = vmul.f32 1.442695, %v988_v3 }
 0x470   : > { %1235 = vpow2.f32 %v991_v47 }
 0x47a   : > { %v1236_v48 = vpop.eup %1235 }
 0x47b   : > { %v996_v49 = vsel %vm980_vm12, %v1236_v48, 0.0 }
 0x47c   : > { %997 = vadd.xlane.f32.xlu0 %v996_v49 }
 0x4ec   : > { %v995_v50 = vpop.xlane.xlu0 %994 }
 0x4ed   : > { %1237 = vlog2.f32 %v995_v50 }
 0x4f7   : > { %v1238_v51 = vpop.eup %1237 }
 0x4f8   : > { %v1000_v52 = vmul.f32 0.6931472, %v1238_v51 }
 0x4fa   : > { %v1003_v53 = vadd.f32 %v1000_v52, %v983_v2 }
 0x4fc   : > { %v1005_v54 = vsub.f32 %v904_v32, %v1003_v53 }
 0x4fe   : > { %1007 = vst.msk [vmem:[%s256_s10] sm:$0x1f] %vm980_vm12, %v1005_v54 }
 0x509   : > { %v998_v55 = vpop.xlane.xlu0 %997 }
 0x50a   : > { %1239 = vlog2.f32 %v998_v55 }
 0x514   : > { %v1240_v56 = vpop.eup %1239 }
 0x515   : > { %v1002_v57 = vmul.f32 0.6931472, %v1240_v56 }
 0x517   : > { %v1004_v58 = vadd.f32 %v1002_v57, %v986_v45 }
 0x519   : > { %v1006_v59 = vsub.f32 %v977_v36, %v1004_v58 }
 0x51b   : > { %1008 = vst.msk [vmem:[%s256_s10 + $0x8] sm:$0x1f] %vm980_vm12, %v1006_v59 }
 0x51c PF: > { %s16_s21 = sadd.s32 1, %s1247_s21  }
 0x51d   : > { %p13_p4 = scmp.ge.s32.totalorder %s16_s21, 4  }
 0x51f   :  { %15 = sbr.rel (!%p13_p4) target bundleno = 1 (0x1), region = 74 }

</bundles_post_ra>
